<compile_context>
chip_gen: v7x
topology: tpu7x:2x2x1
jax: 0.10.0
libtpu: 0.0.40
codegen_flags: <defaults>
</compile_context>

<pallas_src>
import numpy as np
import jax
import jax.numpy as jnp
from jax.experimental import pallas as pl
from jax.experimental.pallas import tpu as pltpu

LANES = 128
SUBLANES = 8
ROW_GROUP = SUBLANES * LANES          # 1024 elements = one (8,128) f32 vreg
MAX_TILE_ROWS = 1024                  # 1024*128*4B = 0.5 MiB per f32 input block
_Z_CLAMP = 1.0e4                      # keeps deg-8 Horner values ~1e32 << f32 max

# ---------------------------------------------------------------------------
# Lanczos (g=7, n=9) log-gamma, with the partial-fraction series collapsed to
# a single rational polynomial P(z)/Q(z) (precomputed in float64 at import).
# ---------------------------------------------------------------------------
_LANCZOS_C0 = 0.99999999999980993
_LANCZOS_COEFS = (676.5203681218851, -1259.1392167224028, 771.32342877765313,
                  -176.61502916214059, 12.507343278686905,
                  -0.13857109526572012, 9.9843695780195716e-6,
                  1.5056327351493116e-7)


def _build_rational():
    # S(z) = c0 + sum_i c_i/(z+i)  ==  P(z)/Q(z),  Q(z) = prod_{i=1..8}(z+i)
    q = np.poly1d([1.0])
    for i in range(1, 9):
        q = q * np.poly1d([1.0, float(i)])
    p = _LANCZOS_C0 * q
    for i, c in enumerate(_LANCZOS_COEFS, start=1):
        r = np.poly1d([1.0])
        for j in range(1, 9):
            if j != i:
                r = r * np.poly1d([1.0, float(j)])
        p = p + c * r
    return tuple(float(x) for x in p.coeffs), tuple(float(x) for x in q.coeffs)


_P_COEFS, _Q_COEFS = _build_rational()


def _horner(coefs, z):
    acc = jnp.full_like(z, coefs[0])
    for c in coefs[1:]:
        acc = acc * z + c
    return acc


# ---------------------------------------------------------------------------
# Kernel
# ---------------------------------------------------------------------------
def _evidential_kernel(y_ref, loga_ref, logb_ref, logl_ref, t_ref, out_ref):
    """Accumulates the sum-reduced per-element losses of one tile into out_ref."""
    @pl.when(pl.program_id(1) == 0)
    def _():
        out_ref[...] = jnp.zeros_like(out_ref)

    y = y_ref[...].astype(jnp.float32)
    loga = loga_ref[...].astype(jnp.float32)
    logb = logb_ref[...].astype(jnp.float32)
    logl = logl_ref[...].astype(jnp.float32)
    tgt = t_ref[...].astype(jnp.float32)

    a = jnp.exp(loga)
    b = jnp.exp(logb)
    l = jnp.exp(logl)

    # term1 = Gamma(a-0.5)/Gamma(a) / (4*l*sqrt(b)), fused in log space using a
    # single Lanczos(g=7) *ratio*.  With lgamma(x) = .5log(2pi)+(z+.5)log(t)-t+
    # log(S(z)), z = x-1, t = z+7.5, and x1 = a-0.5, x2 = a  (t2 - t1 = 0.5):
    #   lgamma(x1)-lgamma(x2) = (a-1)log(a+6) - (a-.5)log(a+6.5) + 0.5 + log(S1/S2)
    # TODO(synk): reflection branch intentionally dropped; assumes a = exp(loga)
    # > 0.5 (the domain on which the loss is defined), as in the reference use.
    z1 = a - 1.5
    z2 = a - 1.0
    # Clamp only the rational-part argument: S(z1)/S(z2) -> 1 for large z, and
    # the clamp keeps every Horner result around ~1e32, safely inside f32.
    zc1 = jnp.minimum(z1, _Z_CLAMP)
    zc2 = jnp.minimum(z2, _Z_CLAMP)
    p1 = _horner(_P_COEFS, zc1)
    q1 = _horner(_Q_COEFS, zc1)
    p2 = _horner(_P_COEFS, zc2)
    q2 = _horner(_Q_COEFS, zc2)
    # S1/S2 = (P1/P2)*(Q2/Q1), ordered so no intermediate product overflows.
    s_ratio = (p1 * pl.reciprocal(p2, approx=True)) * (
        q2 * pl.reciprocal(q1, approx=True))
    term1 = 0.25 * s_ratio * jnp.exp(
        (a - 1.0) * jnp.log(a + 6.0) - (a - 0.5) * jnp.log(a + 6.5)
        + 0.5 - logl - 0.5 * logb)

    diff = y - tgt
    term2 = 2.0 * b * (1.0 + l) + (2.0 * a - 1.0) * l * diff * diff
    loss = term1 * term2 + jnp.abs(diff) * (2.0 * a + l)

    # Reduce the (tile_rows,128) tile to one (8,128) vreg before touching the
    # resident accumulator (leading-dim split -> plain vector adds, no XLU).
    tile_rows = loss.shape[0]
    reduced = jnp.sum(loss.reshape(tile_rows // SUBLANES, SUBLANES, LANES), axis=0)
    out_ref[...] += reduced


# ---------------------------------------------------------------------------
# Launch helpers
# ---------------------------------------------------------------------------
def _num_tensorcores():
    """Best-effort TensorCore count; defaults to 1 on any doubt (v5e/v6e)."""
    # TODO(synk): switch the outer axis to pltpu.CORE_PARALLEL (or a
    # create_tensorcore_mesh + pl.core_map split) on v7x once verified;
    # "parallel" is used here as the portable megacore-sharding hint.
    try:
        info = pltpu.get_tpu_info()
    except Exception:
        return 1
    for name in ("num_cores", "core_count", "num_tensorcores", "tensorcore_count"):
        val = getattr(info, name, None)
        if isinstance(val, int) and val >= 1:
            return val
    return 1


def _launch(arrs, n_blocks, tile_rows):
    """Sum of losses over the first n_blocks*tile_rows rows of the (R,128) arrays."""
    cores = _num_tensorcores()
    n_par = cores if (cores > 1 and n_blocks % cores == 0) else 1
    inner = n_blocks // n_par

    in_blk = pl.BlockSpec((tile_rows, LANES), lambda p, i: (p * inner + i, 0))
    out_blk = pl.BlockSpec((SUBLANES, LANES), lambda p, i: (p, 0))

    partial = pl.pallas_call(
        _evidential_kernel,
        out_shape=jax.ShapeDtypeStruct((n_par * SUBLANES, LANES), jnp.float32),
        grid_spec=pltpu.PrefetchScalarGridSpec(
            num_scalar_prefetch=0,
            grid=(n_par, inner),
            in_specs=[in_blk] * 5,
            out_specs=out_blk,
        ),
        compiler_params=pltpu.CompilerParams(
            dimension_semantics=("parallel", "arbitrary")),
    )(*arrs)
    return jnp.sum(partial)


def _bulk_sum(arrs2d, rows):
    tile_rows = min(MAX_TILE_ROWS, rows)
    n_blocks = rows // tile_rows
    total = _launch(arrs2d, n_blocks, tile_rows)
    rem_rows = rows - n_blocks * tile_rows
    if rem_rows:
        # Small (<1024-row) leftover: one extra single-block call, same kernel.
        rem = [a[n_blocks * tile_rows:] for a in arrs2d]
        total = total + _launch(rem, 1, rem_rows)
    return total


def _jax_loss_sum(y, loga, logb, logl, tgt):
    """Plain-JAX loss sum for the (<1024-element) unaligned tail."""
    a = jnp.exp(loga)
    b = jnp.exp(logb)
    l = jnp.exp(logl)
    lgam = jax.scipy.special.gammaln
    term1 = 0.25 * jnp.exp(lgam(a - 0.5) - lgam(a) - logl - 0.5 * logb)
    d = y - tgt
    term2 = 2.0 * b * (1.0 + l) + (2.0 * a - 1.0) * l * d * d
    return jnp.sum(term1 * term2 + jnp.abs(d) * (2.0 * a + l))


def evidential_loss(mu, alpha, beta, lamda, targets):
    """Pallas implementation of EvidentialLoss.forward (returns a scalar)."""
    flat = [jnp.asarray(x).reshape(-1)
            for x in (mu, alpha, beta, lamda, targets)]
    n = int(flat[0].size)

    # Split into an (8,128)-aligned bulk handled by the kernel and a <1024-elem
    # tail handled in plain JAX -- no full-array jnp.pad copies.
    n_tail = n % ROW_GROUP
    n_bulk = n - n_tail

    total = jnp.float32(0.0)
    if n_bulk:
        rows = n_bulk // LANES
        if n_tail:
            # TODO(synk): for huge unaligned inputs this prefix slice may still
            # copy; a manual-DMA (pl.ANY) path could read the flat buffer in place.
            arrs = [f[:n_bulk].reshape(rows, LANES) for f in flat]
        else:
            arrs = [f.reshape(rows, LANES) for f in flat]   # zero-copy reshape
        total = total + _bulk_sum(arrs, rows)
    if n_tail:
        total = total + _jax_loss_sum(
            *(f[n_bulk:].astype(jnp.float32) for f in flat))
    return total / jnp.float32(n)


def _reference_loss(mu, alpha, beta, lamda, targets):
    y = mu.reshape(-1)
    a = jnp.exp(alpha.reshape(-1))
    b = jnp.exp(beta.reshape(-1))
    l = jnp.exp(lamda.reshape(-1))
    t = targets.reshape(-1)
    lgam = jax.scipy.special.gammaln
    term1 = jnp.exp(lgam(a - 0.5)) / (4 * jnp.exp(lgam(a)) * l * jnp.sqrt(b))
    term2 = 2 * b * (1 + l) + (2 * a - 1) * l * (y - t) ** 2
    return jnp.mean(term1 * term2 + jnp.abs(y - t) * (2 * a + l))


if __name__ == "__main__":
    key = jax.random.PRNGKey(0)
    k1, k2, k3, k4, k5 = jax.random.split(key, 5)
    shape = (2, 4, 16, 16)  # small NCHW-shaped "prediction maps"

    mu = jax.random.normal(k1, shape, jnp.float32)
    # keep a = exp(alpha) comfortably > 0.5 so lgamma(a-0.5) stays off the pole
    alpha = 0.5 * jnp.abs(jax.random.normal(k2, shape, jnp.float32)) + 0.1
    beta = 0.3 * jax.random.normal(k3, shape, jnp.float32)
    lamda = 0.3 * jax.random.normal(k4, shape, jnp.float32)
    targets = jax.random.normal(k5, shape, jnp.float32)

    loss = evidential_loss(mu, alpha, beta, lamda, targets)
    loss = jax.block_until_ready(loss)

    ref = _reference_loss(mu, alpha, beta, lamda, targets)
    assert jnp.isfinite(loss), "kernel produced non-finite loss"
    assert jnp.allclose(loss, ref, rtol=1e-2, atol=1e-3), (loss, ref)
    print("KERNEL_OK")
</pallas_src>

<mosaic_0001>
module attributes {stable_mosaic.version = 11 : i64} {
  func.func @_evidential_kernel(%arg0: i32, %arg1: i32, %arg2: memref<16x128xf32, #tpu.memory_space<vmem>>, %arg3: memref<16x128xf32, #tpu.memory_space<vmem>>, %arg4: memref<16x128xf32, #tpu.memory_space<vmem>>, %arg5: memref<16x128xf32, #tpu.memory_space<vmem>>, %arg6: memref<16x128xf32, #tpu.memory_space<vmem>>, %arg7: memref<8x128xf32, #tpu.memory_space<vmem>>) attributes {dimension_semantics = [#tpu.dimension_semantics<parallel>, #tpu.dimension_semantics<arbitrary>], iteration_bounds = array<i64: 1, 1>, scalar_prefetch = 0 : i64, scratch_operands = 0 : i64, tpu.core_type = #tpu.core_type<tc>, window_params = [{transform_indices = @transform_0, window_bounds = array<i64: 16, 128>}, {transform_indices = @transform_1, window_bounds = array<i64: 16, 128>}, {transform_indices = @transform_2, window_bounds = array<i64: 16, 128>}, {transform_indices = @transform_3, window_bounds = array<i64: 16, 128>}, {transform_indices = @transform_4, window_bounds = array<i64: 16, 128>}, {transform_indices = @transform_5, window_bounds = array<i64: 8, 128>}]} {
    %c0_i32 = arith.constant 0 : i32
    %0 = arith.cmpi eq, %arg1, %c0_i32 : i32
    %1 = arith.extui %0 : i1 to i32
    %c0_i32_0 = arith.constant 0 : i32
    %2 = arith.cmpi ne, %1, %c0_i32_0 : i32
    scf.if %2 {
      %cst_66 = arith.constant 0.000000e+00 : f32
      %173 = vector.broadcast %cst_66 : f32 to vector<8x128xf32>
      %c0_67 = arith.constant 0 : index
      %c0_68 = arith.constant 0 : index
      %174 = vector.load %arg7[%c0_67, %c0_68] : memref<8x128xf32, #tpu.memory_space<vmem>>, vector<8x128xf32>
      tpu.vector_store %arg7[%c0_67, %c0_68], %173 {strides = array<i32>} : memref<8x128xf32, #tpu.memory_space<vmem>>, vector<8x128xf32>,
    } else {
    }
    %c0 = arith.constant 0 : index
    %c0_1 = arith.constant 0 : index
    %3 = vector.load %arg2[%c0, %c0_1] : memref<16x128xf32, #tpu.memory_space<vmem>>, vector<16x128xf32>
    %c0_2 = arith.constant 0 : index
    %c0_3 = arith.constant 0 : index
    %4 = vector.load %arg3[%c0_2, %c0_3] : memref<16x128xf32, #tpu.memory_space<vmem>>, vector<16x128xf32>
    %c0_4 = arith.constant 0 : index
    %c0_5 = arith.constant 0 : index
    %5 = vector.load %arg4[%c0_4, %c0_5] : memref<16x128xf32, #tpu.memory_space<vmem>>, vector<16x128xf32>
    %c0_6 = arith.constant 0 : index
    %c0_7 = arith.constant 0 : index
    %6 = vector.load %arg5[%c0_6, %c0_7] : memref<16x128xf32, #tpu.memory_space<vmem>>, vector<16x128xf32>
    %c0_8 = arith.constant 0 : index
    %c0_9 = arith.constant 0 : index
    %7 = vector.load %arg6[%c0_8, %c0_9] : memref<16x128xf32, #tpu.memory_space<vmem>>, vector<16x128xf32>
    %8 = math.exp %4 : vector<16x128xf32>
    %9 = math.exp %5 : vector<16x128xf32>
    %10 = math.exp %6 : vector<16x128xf32>
    %cst = arith.constant 1.500000e+00 : f32
    %11 = vector.broadcast %cst : f32 to vector<16x128xf32>
    %12 = arith.subf %8, %11 : vector<16x128xf32>
    %cst_10 = arith.constant 1.000000e+00 : f32
    %13 = vector.broadcast %cst_10 : f32 to vector<16x128xf32>
    %14 = arith.subf %8, %13 : vector<16x128xf32>
    %cst_11 = arith.constant 1.000000e+04 : f32
    %15 = vector.broadcast %cst_11 : f32 to vector<16x128xf32>
    %16 = arith.minimumf %12, %15 : vector<16x128xf32>
    %cst_12 = arith.constant 1.000000e+04 : f32
    %17 = vector.broadcast %cst_12 : f32 to vector<16x128xf32>
    %18 = arith.minimumf %14, %17 : vector<16x128xf32>
    %cst_13 = arith.constant 1.000000e+00 : f32
    %19 = vector.broadcast %cst_13 : f32 to vector<16x128xf32>
    %20 = arith.mulf %19, %16 : vector<16x128xf32>
    %cst_14 = arith.constant 60.4583321 : f32
    %21 = vector.broadcast %cst_14 : f32 to vector<16x128xf32>
    %22 = arith.addf %20, %21 : vector<16x128xf32>
    %23 = arith.mulf %22, %16 : vector<16x128xf32>
    %cst_15 = arith.constant 1599.04248 : f32
    %24 = vector.broadcast %cst_15 : f32 to vector<16x128xf32>
    %25 = arith.addf %23, %24 : vector<16x128xf32>
    %26 = arith.mulf %25, %16 : vector<16x128xf32>
    %cst_16 = arith.constant 24165.5098 : f32
    %27 = vector.broadcast %cst_16 : f32 to vector<16x128xf32>
    %28 = arith.addf %26, %27 : vector<16x128xf32>
    %29 = arith.mulf %28, %16 : vector<16x128xf32>
    %cst_17 = arith.constant 228235.219 : f32
    %30 = vector.broadcast %cst_17 : f32 to vector<16x128xf32>
    %31 = arith.addf %29, %30 : vector<16x128xf32>
    %32 = arith.mulf %31, %16 : vector<16x128xf32>
    %cst_18 = arith.constant 1379496.25 : f32
    %33 = vector.broadcast %cst_18 : f32 to vector<16x128xf32>
    %34 = arith.addf %32, %33 : vector<16x128xf32>
    %35 = arith.mulf %34, %16 : vector<16x128xf32>
    %cst_19 = arith.constant 0x4A9F05EA : f32
    %36 = vector.broadcast %cst_19 : f32 to vector<16x128xf32>
    %37 = arith.addf %35, %36 : vector<16x128xf32>
    %38 = arith.mulf %37, %16 : vector<16x128xf32>
    %cst_20 = arith.constant 0x4B2B9D51 : f32
    %39 = vector.broadcast %cst_20 : f32 to vector<16x128xf32>
    %40 = arith.addf %38, %39 : vector<16x128xf32>
    %41 = arith.mulf %40, %16 : vector<16x128xf32>
    %cst_21 = arith.constant 0x4B220ADA : f32
    %42 = vector.broadcast %cst_21 : f32 to vector<16x128xf32>
    %43 = arith.addf %41, %42 : vector<16x128xf32>
    %cst_22 = arith.constant 1.000000e+00 : f32
    %44 = vector.broadcast %cst_22 : f32 to vector<16x128xf32>
    %45 = arith.mulf %44, %16 : vector<16x128xf32>
    %cst_23 = arith.constant 3.600000e+01 : f32
    %46 = vector.broadcast %cst_23 : f32 to vector<16x128xf32>
    %47 = arith.addf %45, %46 : vector<16x128xf32>
    %48 = arith.mulf %47, %16 : vector<16x128xf32>
    %cst_24 = arith.constant 5.460000e+02 : f32
    %49 = vector.broadcast %cst_24 : f32 to vector<16x128xf32>
    %50 = arith.addf %48, %49 : vector<16x128xf32>
    %51 = arith.mulf %50, %16 : vector<16x128xf32>
    %cst_25 = arith.constant 4.536000e+03 : f32
    %52 = vector.broadcast %cst_25 : f32 to vector<16x128xf32>
    %53 = arith.addf %51, %52 : vector<16x128xf32>
    %54 = arith.mulf %53, %16 : vector<16x128xf32>
    %cst_26 = arith.constant 2.244900e+04 : f32
    %55 = vector.broadcast %cst_26 : f32 to vector<16x128xf32>
    %56 = arith.addf %54, %55 : vector<16x128xf32>
    %57 = arith.mulf %56, %16 : vector<16x128xf32>
    %cst_27 = arith.constant 6.728400e+04 : f32
    %58 = vector.broadcast %cst_27 : f32 to vector<16x128xf32>
    %59 = arith.addf %57, %58 : vector<16x128xf32>
    %60 = arith.mulf %59, %16 : vector<16x128xf32>
    %cst_28 = arith.constant 1.181240e+05 : f32
    %61 = vector.broadcast %cst_28 : f32 to vector<16x128xf32>
    %62 = arith.addf %60, %61 : vector<16x128xf32>
    %63 = arith.mulf %62, %16 : vector<16x128xf32>
    %cst_29 = arith.constant 1.095840e+05 : f32
    %64 = vector.broadcast %cst_29 : f32 to vector<16x128xf32>
    %65 = arith.addf %63, %64 : vector<16x128xf32>
    %66 = arith.mulf %65, %16 : vector<16x128xf32>
    %cst_30 = arith.constant 4.032000e+04 : f32
    %67 = vector.broadcast %cst_30 : f32 to vector<16x128xf32>
    %68 = arith.addf %66, %67 : vector<16x128xf32>
    %cst_31 = arith.constant 1.000000e+00 : f32
    %69 = vector.broadcast %cst_31 : f32 to vector<16x128xf32>
    %70 = arith.mulf %69, %18 : vector<16x128xf32>
    %cst_32 = arith.constant 60.4583321 : f32
    %71 = vector.broadcast %cst_32 : f32 to vector<16x128xf32>
    %72 = arith.addf %70, %71 : vector<16x128xf32>
    %73 = arith.mulf %72, %18 : vector<16x128xf32>
    %cst_33 = arith.constant 1599.04248 : f32
    %74 = vector.broadcast %cst_33 : f32 to vector<16x128xf32>
    %75 = arith.addf %73, %74 : vector<16x128xf32>
    %76 = arith.mulf %75, %18 : vector<16x128xf32>
    %cst_34 = arith.constant 24165.5098 : f32
    %77 = vector.broadcast %cst_34 : f32 to vector<16x128xf32>
    %78 = arith.addf %76, %77 : vector<16x128xf32>
    %79 = arith.mulf %78, %18 : vector<16x128xf32>
    %cst_35 = arith.constant 228235.219 : f32
    %80 = vector.broadcast %cst_35 : f32 to vector<16x128xf32>
    %81 = arith.addf %79, %80 : vector<16x128xf32>
    %82 = arith.mulf %81, %18 : vector<16x128xf32>
    %cst_36 = arith.constant 1379496.25 : f32
    %83 = vector.broadcast %cst_36 : f32 to vector<16x128xf32>
    %84 = arith.addf %82, %83 : vector<16x128xf32>
    %85 = arith.mulf %84, %18 : vector<16x128xf32>
    %cst_37 = arith.constant 0x4A9F05EA : f32
    %86 = vector.broadcast %cst_37 : f32 to vector<16x128xf32>
    %87 = arith.addf %85, %86 : vector<16x128xf32>
    %88 = arith.mulf %87, %18 : vector<16x128xf32>
    %cst_38 = arith.constant 0x4B2B9D51 : f32
    %89 = vector.broadcast %cst_38 : f32 to vector<16x128xf32>
    %90 = arith.addf %88, %89 : vector<16x128xf32>
    %91 = arith.mulf %90, %18 : vector<16x128xf32>
    %cst_39 = arith.constant 0x4B220ADA : f32
    %92 = vector.broadcast %cst_39 : f32 to vector<16x128xf32>
    %93 = arith.addf %91, %92 : vector<16x128xf32>
    %cst_40 = arith.constant 1.000000e+00 : f32
    %94 = vector.broadcast %cst_40 : f32 to vector<16x128xf32>
    %95 = arith.mulf %94, %18 : vector<16x128xf32>
    %cst_41 = arith.constant 3.600000e+01 : f32
    %96 = vector.broadcast %cst_41 : f32 to vector<16x128xf32>
    %97 = arith.addf %95, %96 : vector<16x128xf32>
    %98 = arith.mulf %97, %18 : vector<16x128xf32>
    %cst_42 = arith.constant 5.460000e+02 : f32
    %99 = vector.broadcast %cst_42 : f32 to vector<16x128xf32>
    %100 = arith.addf %98, %99 : vector<16x128xf32>
    %101 = arith.mulf %100, %18 : vector<16x128xf32>
    %cst_43 = arith.constant 4.536000e+03 : f32
    %102 = vector.broadcast %cst_43 : f32 to vector<16x128xf32>
    %103 = arith.addf %101, %102 : vector<16x128xf32>
    %104 = arith.mulf %103, %18 : vector<16x128xf32>
    %cst_44 = arith.constant 2.244900e+04 : f32
    %105 = vector.broadcast %cst_44 : f32 to vector<16x128xf32>
    %106 = arith.addf %104, %105 : vector<16x128xf32>
    %107 = arith.mulf %106, %18 : vector<16x128xf32>
    %cst_45 = arith.constant 6.728400e+04 : f32
    %108 = vector.broadcast %cst_45 : f32 to vector<16x128xf32>
    %109 = arith.addf %107, %108 : vector<16x128xf32>
    %110 = arith.mulf %109, %18 : vector<16x128xf32>
    %cst_46 = arith.constant 1.181240e+05 : f32
    %111 = vector.broadcast %cst_46 : f32 to vector<16x128xf32>
    %112 = arith.addf %110, %111 : vector<16x128xf32>
    %113 = arith.mulf %112, %18 : vector<16x128xf32>
    %cst_47 = arith.constant 1.095840e+05 : f32
    %114 = vector.broadcast %cst_47 : f32 to vector<16x128xf32>
    %115 = arith.addf %113, %114 : vector<16x128xf32>
    %116 = arith.mulf %115, %18 : vector<16x128xf32>
    %cst_48 = arith.constant 4.032000e+04 : f32
    %117 = vector.broadcast %cst_48 : f32 to vector<16x128xf32>
    %118 = arith.addf %116, %117 : vector<16x128xf32>
    %119 = tpu.reciprocal %93 {approx = true} : vector<16x128xf32> -> vector<16x128xf32>
    %120 = arith.mulf %43, %119 : vector<16x128xf32>
    %121 = tpu.reciprocal %68 {approx = true} : vector<16x128xf32> -> vector<16x128xf32>
    %122 = arith.mulf %118, %121 : vector<16x128xf32>
    %123 = arith.mulf %120, %122 : vector<16x128xf32>
    %cst_49 = arith.constant 2.500000e-01 : f32
    %124 = vector.broadcast %cst_49 : f32 to vector<16x128xf32>
    %125 = arith.mulf %124, %123 : vector<16x128xf32>
    %cst_50 = arith.constant 1.000000e+00 : f32
    %126 = vector.broadcast %cst_50 : f32 to vector<16x128xf32>
    %127 = arith.subf %8, %126 : vector<16x128xf32>
    %cst_51 = arith.constant 6.000000e+00 : f32
    %128 = vector.broadcast %cst_51 : f32 to vector<16x128xf32>
    %129 = arith.addf %8, %128 : vector<16x128xf32>
    %130 = math.log %129 : vector<16x128xf32>
    %131 = arith.mulf %127, %130 : vector<16x128xf32>
    %cst_52 = arith.constant 5.000000e-01 : f32
    %132 = vector.broadcast %cst_52 : f32 to vector<16x128xf32>
    %133 = arith.subf %8, %132 : vector<16x128xf32>
    %cst_53 = arith.constant 6.500000e+00 : f32
    %134 = vector.broadcast %cst_53 : f32 to vector<16x128xf32>
    %135 = arith.addf %8, %134 : vector<16x128xf32>
    %136 = math.log %135 : vector<16x128xf32>
    %137 = arith.mulf %133, %136 : vector<16x128xf32>
    %138 = arith.subf %131, %137 : vector<16x128xf32>
    %cst_54 = arith.constant 5.000000e-01 : f32
    %139 = vector.broadcast %cst_54 : f32 to vector<16x128xf32>
    %140 = arith.addf %138, %139 : vector<16x128xf32>
    %141 = arith.subf %140, %6 : vector<16x128xf32>
    %cst_55 = arith.constant 5.000000e-01 : f32
    %142 = vector.broadcast %cst_55 : f32 to vector<16x128xf32>
    %143 = arith.mulf %142, %5 : vector<16x128xf32>
    %144 = arith.subf %141, %143 : vector<16x128xf32>
    %145 = math.exp %144 : vector<16x128xf32>
    %146 = arith.mulf %125, %145 : vector<16x128xf32>
    %147 = arith.subf %3, %7 : vector<16x128xf32>
    %cst_56 = arith.constant 2.000000e+00 : f32
    %148 = vector.broadcast %cst_56 : f32 to vector<16x128xf32>
    %149 = arith.mulf %148, %9 : vector<16x128xf32>
    %cst_57 = arith.constant 1.000000e+00 : f32
    %150 = vector.broadcast %cst_57 : f32 to vector<16x128xf32>
    %151 = arith.addf %150, %10 : vector<16x128xf32>
    %152 = arith.mulf %149, %151 : vector<16x128xf32>
    %cst_58 = arith.constant 2.000000e+00 : f32
    %153 = vector.broadcast %cst_58 : f32 to vector<16x128xf32>
    %154 = arith.mulf %153, %8 : vector<16x128xf32>
    %cst_59 = arith.constant 1.000000e+00 : f32
    %155 = vector.broadcast %cst_59 : f32 to vector<16x128xf32>
    %156 = arith.subf %154, %155 : vector<16x128xf32>
    %157 = arith.mulf %156, %10 : vector<16x128xf32>
    %158 = arith.mulf %157, %147 : vector<16x128xf32>
    %159 = arith.mulf %158, %147 : vector<16x128xf32>
    %160 = arith.addf %152, %159 : vector<16x128xf32>
    %161 = arith.mulf %146, %160 : vector<16x128xf32>
    %162 = math.absf %147 : vector<16x128xf32>
    %cst_60 = arith.constant 2.000000e+00 : f32
    %163 = vector.broadcast %cst_60 : f32 to vector<16x128xf32>
    %164 = arith.mulf %163, %8 : vector<16x128xf32>
    %165 = arith.addf %164, %10 : vector<16x128xf32>
    %166 = arith.mulf %162, %165 : vector<16x128xf32>
    %167 = arith.addf %161, %166 : vector<16x128xf32>
    %168 = vector.shape_cast %167 : vector<16x128xf32> to vector<2x8x128xf32>
    %cst_61 = arith.constant dense<0.000000e+00> : vector<8x128xf32>
    %169 = vector.multi_reduction <add>, %168, %cst_61 [0] : vector<2x8x128xf32> to vector<8x128xf32>
    %c0_62 = arith.constant 0 : index
    %c0_63 = arith.constant 0 : index
    %170 = vector.load %arg7[%c0_62, %c0_63] : memref<8x128xf32, #tpu.memory_space<vmem>>, vector<8x128xf32>
    %171 = arith.addf %170, %169 : vector<8x128xf32>
    %c0_64 = arith.constant 0 : index
    %c0_65 = arith.constant 0 : index
    %172 = vector.load %arg7[%c0_64, %c0_65] : memref<8x128xf32, #tpu.memory_space<vmem>>, vector<8x128xf32>
    tpu.vector_store %arg7[%c0_64, %c0_65], %171 {strides = array<i32>} : memref<8x128xf32, #tpu.memory_space<vmem>>, vector<8x128xf32>,
    return
  }
  func.func @transform_0(%arg0: i32, %arg1: i32) -> (i32, i32) {
    %c1_i32 = arith.constant 1 : i32
    %0 = arith.muli %arg0, %c1_i32 : i32
    %1 = arith.addi %0, %arg1 : i32
    %c0_i32 = arith.constant 0 : i32
    %c0_i32_0 = arith.constant 0 : i32
    return %1, %c0_i32 : i32, i32
  }
  func.func @transform_1(%arg0: i32, %arg1: i32) -> (i32, i32) {
    %c1_i32 = arith.constant 1 : i32
    %0 = arith.muli %arg0, %c1_i32 : i32
    %1 = arith.addi %0, %arg1 : i32
    %c0_i32 = arith.constant 0 : i32
    %c0_i32_0 = arith.constant 0 : i32
    return %1, %c0_i32 : i32, i32
  }
  func.func @transform_2(%arg0: i32, %arg1: i32) -> (i32, i32) {
    %c1_i32 = arith.constant 1 : i32
    %0 = arith.muli %arg0, %c1_i32 : i32
    %1 = arith.addi %0, %arg1 : i32
    %c0_i32 = arith.constant 0 : i32
    %c0_i32_0 = arith.constant 0 : i32
    return %1, %c0_i32 : i32, i32
  }
  func.func @transform_3(%arg0: i32, %arg1: i32) -> (i32, i32) {
    %c1_i32 = arith.constant 1 : i32
    %0 = arith.muli %arg0, %c1_i32 : i32
    %1 = arith.addi %0, %arg1 : i32
    %c0_i32 = arith.constant 0 : i32
    %c0_i32_0 = arith.constant 0 : i32
    return %1, %c0_i32 : i32, i32
  }
  func.func @transform_4(%arg0: i32, %arg1: i32) -> (i32, i32) {
    %c1_i32 = arith.constant 1 : i32
    %0 = arith.muli %arg0, %c1_i32 : i32
    %1 = arith.addi %0, %arg1 : i32
    %c0_i32 = arith.constant 0 : i32
    %c0_i32_0 = arith.constant 0 : i32
    return %1, %c0_i32 : i32, i32
  }
  func.func @transform_5(%arg0: i32, %arg1: i32) -> (i32, i32) {
    %c0_i32 = arith.constant 0 : i32
    %c0_i32_0 = arith.constant 0 : i32
    return %arg0, %c0_i32 : i32, i32
  }
}

</mosaic_0001>

<bundles_post_ra>
// kernel: tpu_custom_call.1
= control target key start
LH: loop header
LB: loop body
LE: loop exit
PB: predicated region body
PF: predicated region fallthrough
CT: control target
= control target key end

     0   :  { %10 = vsyncpa [#allocation3], 0  ;;  %s817_s0 = inlined_call_operand.hbm [shape: f32[16,128], index: 0, kind: input, shape index: {}]   ;;  %s818_s1 = inlined_call_operand.hbm [shape: f32[16,128], index: 1, kind: input, shape index: {}]   ;;  %s819_s2 = inlined_call_operand.hbm [shape: f32[16,128], index: 2, kind: input, shape index: {}]   ;;  %s820_s3 = inlined_call_operand.hbm [shape: f32[16,128], index: 3, kind: input, shape index: {}]   ;;  %s821_s4 = inlined_call_operand.hbm [shape: f32[16,128], index: 4, kind: input, shape index: {}]   ;;  %s822_s5 = inlined_call_operand.hbm [shape: f32[8,128], index: 5, kind: output, shape index: {}]  }
   0x1   :  { %11 = vsyncpa [#allocation6], 0 }
   0x2   :  { %12 = vsyncpa [#allocation9], 0 }
   0x3   :  { %13 = vsyncpa [#allocation4], 0  ;;  %s560_s18 = smov [#allocation5]   ;;  %s561_s20 = smov [#allocation8]  }
   0x4   :  { %s39_s19 = sshll.u32 %s560_s18, 4  ;;  %s71_s21 = sshll.u32 %s561_s20, 4  ;;  %s40_s19 = int_to_ptr.vmem [resolvable:$true] %s39_s19  ;;  %s598_s21 = int_to_ptr.vmem [resolvable:$true] %s71_s21 }
   0x5   :  { %s420_s24 = scalar_lea.hbm %s818_s1, 256 }
   0x6   :  { %p421_p0 = scmp.ne.s32.totalorder %s818_s1, %s420_s24  ;;  %p424_p1 = scmp.lt.u32.totalorder %s420_s24, %s818_s1 }
   0x8   :  { %p426_p2 = pnand %p424_p1, %p421_p0 }
   0xa   :  { %429 = shalt.err (!%p426_p2)
}
   0xb   :  { %s430_s29 = scalar_lea.vmem %s40_s19, 256  ;;  %p435_p4 = scmp.lt.s32.totalorder %s40_s19, %s40_s19 }
   0xc   :  { %p431_p3 = scmp.ne.s32.totalorder %s40_s19, %s430_s29  ;;  %p436_p5 = scmp.lt.s32.totalorder %s430_s29, %s430_s29 }
   0xe   :  { %p437_p6 = por %p436_p5, %p435_p4 }
  0x10   :  { %p438_p7 = pnand %p437_p6, %p431_p3 }
  0x12   :  { %441 = shalt.err (!%p438_p7)
}
  0x13   :  { %s562_s30 = smov 128   ;;  %s563_s6 = smov 8  }
  0x14   :  { %45 = dma.hbm_to_vmem [thread:$0]  %s818_s1, 256, %s40_s19, [#allocation6], %s562_s30, %s562_s30, %s563_s6  }
  0x15   :  { %s442_s11 = scalar_lea.hbm %s820_s3, 256 }
  0x16   :  { %p443_p8 = scmp.ne.s32.totalorder %s820_s3, %s442_s11  ;;  %p446_p9 = scmp.lt.u32.totalorder %s442_s11, %s820_s3 }
  0x18   :  { %p448_p10 = pnand %p446_p9, %p443_p8 }
  0x1a   :  { %451 = shalt.err (!%p448_p10)
}
  0x1b   :  { %s452_s16 = scalar_lea.vmem %s598_s21, 256  ;;  %p457_p12 = scmp.lt.s32.totalorder %s598_s21, %s598_s21 }
  0x1c   :  { %p453_p11 = scmp.ne.s32.totalorder %s598_s21, %s452_s16  ;;  %p458_p13 = scmp.lt.s32.totalorder %s452_s16, %s452_s16 }
  0x1e   :  { %p459_p0 = por %p458_p13, %p457_p12 }
  0x20   :  { %p460_p1 = pnand %p459_p0, %p453_p11 }
  0x22   :  { %463 = shalt.err (!%p460_p1)
}
  0x23   :  { %77 = dma.hbm_to_vmem [thread:$0]  %s820_s3, 256, %s598_s21, [#allocation9], %s562_s30, %s562_s30, %s563_s6  }
  0x24   :  { %s564_s18 = smov [#allocation2]   ;;  %s565_s20 = smov [#allocation7]  }
  0x25   :  { %s23_s19 = sshll.u32 %s564_s18, 4  ;;  %s55_s22 = sshll.u32 %s565_s20, 4  ;;  %s24_s19 = int_to_ptr.vmem [resolvable:$true] %s23_s19  ;;  %s635_s22 = int_to_ptr.vmem [resolvable:$true] %s55_s22 }
  0x26   :  { %s464_s25 = scalar_lea.hbm %s817_s0, 256 }
  0x27   :  { %p465_p2 = scmp.ne.s32.totalorder %s817_s0, %s464_s25  ;;  %p468_p3 = scmp.lt.u32.totalorder %s464_s25, %s817_s0 }
  0x29   :  { %p470_p4 = pnand %p468_p3, %p465_p2 }
  0x2b   :  { %473 = shalt.err (!%p470_p4)
}
  0x2c   :  { %s474_s3 = scalar_lea.vmem %s24_s19, 256  ;;  %p479_p6 = scmp.lt.s32.totalorder %s24_s19, %s24_s19 }
  0x2d   :  { %p475_p5 = scmp.ne.s32.totalorder %s24_s19, %s474_s3  ;;  %p480_p7 = scmp.lt.s32.totalorder %s474_s3, %s474_s3 }
  0x2f   :  { %p481_p8 = por %p480_p7, %p479_p6 }
  0x31   :  { %p482_p9 = pnand %p481_p8, %p475_p5 }
  0x33   :  { %485 = shalt.err (!%p482_p9)
}
  0x34   :  { %29 = dma.hbm_to_vmem [thread:$0]  %s817_s0, 256, %s24_s19, [#allocation3], %s562_s30, %s562_s30, %s563_s6  }
  0x35   :  { %s486_s10 = scalar_lea.hbm %s819_s2, 256 }
  0x36   :  { %p487_p10 = scmp.ne.s32.totalorder %s819_s2, %s486_s10  ;;  %p490_p11 = scmp.lt.u32.totalorder %s486_s10, %s819_s2 }
  0x38   :  { %p492_p12 = pnand %p490_p11, %p487_p10 }
  0x3a   :  { %495 = shalt.err (!%p492_p12)
}
  0x3b   :  { %s496_s15 = scalar_lea.vmem %s635_s22, 256  ;;  %p501_p0 = scmp.lt.s32.totalorder %s635_s22, %s635_s22 }
  0x3c   :  { %p497_p13 = scmp.ne.s32.totalorder %s635_s22, %s496_s15  ;;  %p502_p1 = scmp.lt.s32.totalorder %s496_s15, %s496_s15 }
  0x3e   :  { %p503_p2 = por %p502_p1, %p501_p0 }
  0x40   :  { %p504_p3 = pnand %p503_p2, %p497_p13 }
  0x42   :  { %507 = shalt.err (!%p504_p3)
}
  0x43   :  { %61 = dma.hbm_to_vmem [thread:$0]  %s819_s2, 256, %s635_s22, [#allocation6], %s562_s30, %s562_s30, %s563_s6  }
  0x44   :  { %s566_s1 = smov [#allocation10]   ;;  %s508_s20 = scalar_lea.hbm %s821_s4, 256 }
  0x45   :  { %s87_s17 = sshll.u32 %s566_s1, 4  ;;  %p509_p4 = scmp.ne.s32.totalorder %s821_s4, %s508_s20  ;;  %s88_s17 = int_to_ptr.vmem [resolvable:$true] %s87_s17 }
  0x46   :  { %p512_p5 = scmp.lt.u32.totalorder %s508_s20, %s821_s4 }
  0x48   :  { %p514_p6 = pnand %p512_p5, %p509_p4 }
  0x4a   :  { %517 = shalt.err (!%p514_p6)
}
  0x4b   :  { %s518_s27 = scalar_lea.vmem %s88_s17, 256  ;;  %p523_p8 = scmp.lt.s32.totalorder %s88_s17, %s88_s17 }
  0x4c   :  { %p519_p7 = scmp.ne.s32.totalorder %s88_s17, %s518_s27  ;;  %p524_p9 = scmp.lt.s32.totalorder %s518_s27, %s518_s27 }
  0x4e   :  { %p525_p10 = por %p524_p9, %p523_p8 }
  0x50   :  { %p526_p11 = pnand %p525_p10, %p519_p7 }
  0x52   :  { %529 = shalt.err (!%p526_p11)
}
  0x53   :  { %93 = dma.hbm_to_vmem [thread:$0]  %s821_s4, 256, %s88_s17, [#allocation9], %s562_s30, %s562_s30, %s563_s6  }
  0x54   :  { %552 = dma.done.wait [#allocation3], 256  }
  0x55   :  { %553 = vsyncadd [#allocation3], 4294967040 }
  0x56   :  { %554 = dma.done.wait [#allocation6], 512  }
  0x57   :  { %555 = vsyncadd [#allocation6], 4294966784 }
  0x58   :  { %556 = dma.done.wait [#allocation9], 512  }
  0x59   :  { %557 = vsyncadd [#allocation9], 4294966784  ;;  %v126_v0 = vld [vmem:[#allocation5] sm:$0xff]  ;;  %v127_v1 = vld [vmem:[#allocation5 + $0x8] sm:$0xff]  ;;  %s567_s4 = smov [#allocation11]  }
  0x5a   :  { %v134_v2 = vmul.f32 1.442695, %v126_v0  ;;  %v136_v3 = vmul.f32 1.442695, %v127_v1  ;;  %s360_s30 = sshll.u32 %s567_s4, 4  ;;  %s361_s30 = int_to_ptr.vmem [resolvable:$true] %s360_s30 }
  0x5b   :  { %s530_s6 = scalar_lea.vmem %s361_s30, 128  ;;  %p535_p13 = scmp.lt.s32.totalorder %s361_s30, %s361_s30 }
  0x5c   :  { %388 = vpow2.f32 %v134_v2  ;;  %p531_p12 = scmp.ne.s32.totalorder %s361_s30, %s530_s6  ;;  %p536_p0 = scmp.lt.s32.totalorder %s530_s6, %s530_s6 }
  0x5d   :  { %390 = vpow2.f32 %v136_v3 }
  0x5e   :  { %p537_p1 = por %p536_p0, %p535_p13 }
  0x60   :  { %p538_p2 = pnand %p537_p1, %p531_p12 }
  0x66   :  { %v687_v4 = vpop.eup %388 }
  0x67   :  { %v689_v5 = vpop.eup %390  ;;  %v371_v6 = vadd.f32 -1.5, %v687_v4  ;;  %v693_v7 = vadd.f32 -1.0, %v687_v4  ;;  %v286_v8 = vadd.f32 6.0, %v687_v4  ;;  %v296_v14 = vadd.f32 6.5, %v687_v4 }
  0x68   :  { %v372_v9 = vadd.f32 -1.5, %v689_v5  ;;  %v698_v10 = vadd.f32 -1.0, %v689_v5  ;;  %v287_v11 = vadd.f32 6.0, %v689_v5  ;;  %v297_v17 = vadd.f32 6.5, %v689_v5 }
  0x69   :  { %v701_v12 = vmin.f32 %v371_v6, 10000.0  ;;  %v704_v13 = vmin.f32 %v693_v7, 10000.0  ;;  %392 = vlog2.f32 %v286_v8 }
  0x6a   :  { %v707_v15 = vmin.f32 %v372_v9, 10000.0  ;;  %v710_v16 = vmin.f32 %v698_v10, 10000.0  ;;  %394 = vlog2.f32 %v287_v11 }
  0x6b   :  { %v154_v18 = vadd.f32 60.458332, %v701_v12  ;;  %v184_v19 = vadd.f32 36.0, %v701_v12  ;;  %v214_v20 = vadd.f32 60.458332, %v704_v13  ;;  %v244_v21 = vadd.f32 36.0, %v704_v13 }
  0x6c   :  { %v155_v22 = vadd.f32 60.458332, %v707_v15  ;;  %v185_v23 = vadd.f32 36.0, %v707_v15  ;;  %v215_v24 = vadd.f32 60.458332, %v710_v16  ;;  %v245_v25 = vadd.f32 36.0, %v710_v16 }
  0x6d   :  { %v156_v26 = vmul.f32 %v154_v18, %v701_v12  ;;  %v186_v27 = vmul.f32 %v184_v19, %v701_v12  ;;  %v216_v28 = vmul.f32 %v214_v20, %v704_v13  ;;  %v246_v29 = vmul.f32 %v244_v21, %v704_v13 }
  0x6e   :  { %v157_v30 = vmul.f32 %v155_v22, %v707_v15  ;;  %v187_v31 = vmul.f32 %v185_v23, %v707_v15  ;;  %v217_v32 = vmul.f32 %v215_v24, %v710_v16  ;;  %v247_v33 = vmul.f32 %v245_v25, %v710_v16  ;;  %v752_v24 = vld [vmem:[#allocation7] sm:$0xff] }
  0x6f   :  { %v158_v34 = vadd.f32 1599.0425, %v156_v26  ;;  %v188_v35 = vadd.f32 546.0, %v186_v27  ;;  %v218_v36 = vadd.f32 1599.0425, %v216_v28  ;;  %v248_v37 = vadd.f32 546.0, %v246_v29 }
  0x70   :  { %v159_v38 = vadd.f32 1599.0425, %v157_v30  ;;  %v189_v39 = vadd.f32 546.0, %v187_v31  ;;  %v219_v40 = vadd.f32 1599.0425, %v217_v32  ;;  %v249_v41 = vadd.f32 546.0, %v247_v33 }
  0x71   :  { %v160_v42 = vmul.f32 %v158_v34, %v701_v12  ;;  %v190_v43 = vmul.f32 %v188_v35, %v701_v12  ;;  %v220_v44 = vmul.f32 %v218_v36, %v704_v13  ;;  %v250_v45 = vmul.f32 %v248_v37, %v704_v13  ;;  %v759_v35 = vld [vmem:[#allocation7 + $0x8] sm:$0xff] }
  0x72   :  { %v161_v46 = vmul.f32 %v159_v38, %v707_v15  ;;  %v191_v47 = vmul.f32 %v189_v39, %v707_v15  ;;  %v221_v48 = vmul.f32 %v219_v40, %v710_v16  ;;  %v251_v49 = vmul.f32 %v249_v41, %v710_v16  ;;  %v764_v40 = vld [vmem:[#allocation8] sm:$0xff]  ;;  %v766_v41 = vld [vmem:[#allocation8 + $0x8] sm:$0xff] }
  0x73   :  { %v737_v50 = vpop.eup %392  ;;  %v162_v51 = vadd.f32 24165.51, %v160_v42  ;;  %v192_v52 = vadd.f32 4536.0, %v190_v43  ;;  %v222_v53 = vadd.f32 24165.51, %v220_v44  ;;  %v252_v54 = vadd.f32 4536.0, %v250_v45 }
  0x74   :  { %v739_v55 = vpop.eup %394  ;;  %v163_v56 = vadd.f32 24165.51, %v161_v46  ;;  %v193_v57 = vadd.f32 4536.0, %v191_v47  ;;  %v223_v58 = vadd.f32 24165.51, %v221_v48  ;;  %v253_v59 = vadd.f32 4536.0, %v251_v49 }
  0x75   :  { %v164_v60 = vmul.f32 %v162_v51, %v701_v12  ;;  %v194_v61 = vmul.f32 %v192_v52, %v701_v12  ;;  %v224_v62 = vmul.f32 %v222_v53, %v704_v13  ;;  %v254_v63 = vmul.f32 %v252_v54, %v704_v13 }
  0x76   :  { %v165_v0 = vmul.f32 %v163_v56, %v707_v15  ;;  %v195_v1 = vmul.f32 %v193_v57, %v707_v15  ;;  %v225_v2 = vmul.f32 %v223_v58, %v710_v16  ;;  %v255_v3 = vmul.f32 %v253_v59, %v710_v16 }
  0x77   :  { %v166_v6 = vadd.f32 228235.22, %v164_v60  ;;  %v196_v8 = vadd.f32 22449.0, %v194_v61  ;;  %v226_v9 = vadd.f32 228235.22, %v224_v62  ;;  %396 = vlog2.f32 %v296_v14 }
  0x78   :  { %v167_v11 = vadd.f32 228235.22, %v165_v0  ;;  %v197_v18 = vadd.f32 22449.0, %v195_v1  ;;  %v227_v19 = vadd.f32 228235.22, %v225_v2  ;;  %398 = vlog2.f32 %v297_v17 }
  0x79   :  { %v168_v20 = vmul.f32 %v166_v6, %v701_v12  ;;  %v198_v21 = vmul.f32 %v196_v8, %v701_v12  ;;  %v228_v22 = vmul.f32 %v226_v9, %v704_v13  ;;  %v256_v23 = vadd.f32 22449.0, %v254_v63 }
  0x7a   :  { %v169_v25 = vmul.f32 %v167_v11, %v707_v15  ;;  %v199_v26 = vmul.f32 %v197_v18, %v707_v15  ;;  %v229_v27 = vmul.f32 %v227_v19, %v710_v16  ;;  %v257_v14 = vadd.f32 22449.0, %v255_v3 }
  0x7b   :  { %v170_v28 = vadd.f32 1379496.3, %v168_v20  ;;  %v200_v29 = vadd.f32 67284.0, %v198_v21  ;;  %v230_v30 = vadd.f32 1379496.3, %v228_v22  ;;  %v258_v17 = vmul.f32 %v256_v23, %v704_v13 }
  0x7c   :  { %v171_v31 = vadd.f32 1379496.3, %v169_v25  ;;  %v201_v32 = vadd.f32 67284.0, %v199_v26  ;;  %v231_v33 = vadd.f32 1379496.3, %v229_v27  ;;  %v259_v34 = vmul.f32 %v257_v14, %v710_v16 }
  0x7d   :  { %v172_v36 = vmul.f32 %v170_v28, %v701_v12  ;;  %v202_v37 = vmul.f32 %v200_v29, %v701_v12  ;;  %v232_v38 = vmul.f32 %v230_v30, %v704_v13  ;;  %v260_v39 = vadd.f32 67284.0, %v258_v17 }
  0x7e   :  { %v173_v42 = vmul.f32 %v171_v31, %v707_v15  ;;  %v203_v43 = vmul.f32 %v201_v32, %v707_v15  ;;  %v233_v44 = vmul.f32 %v231_v33, %v710_v16  ;;  %v261_v45 = vadd.f32 67284.0, %v259_v34 }
  0x7f   :  { %v138_v46 = vmul.f32 1.442695, %v752_v24  ;;  %v204_v47 = vadd.f32 118124.0, %v202_v37  ;;  %v234_v48 = vadd.f32 5210869.0, %v232_v38  ;;  %v262_v49 = vmul.f32 %v260_v39, %v704_v13 }
  0x80   :  { %v140_v51 = vmul.f32 1.442695, %v759_v35  ;;  %v205_v52 = vadd.f32 118124.0, %v203_v43  ;;  %v235_v53 = vadd.f32 5210869.0, %v233_v44  ;;  %v263_v54 = vmul.f32 %v261_v45, %v710_v16 }
  0x81   :  { %v397_v56 = vpop.eup %396  ;;  %v142_v57 = vmul.f32 1.442695, %v764_v40  ;;  %v174_v58 = vadd.f32 5210869.0, %v172_v36  ;;  %v206_v59 = vmul.f32 %v204_v47, %v701_v12  ;;  %v236_v60 = vmul.f32 %v234_v48, %v704_v13 }
  0x82   :  { %v399_v61 = vpop.eup %398  ;;  %v144_v62 = vmul.f32 1.442695, %v766_v41  ;;  %v175_v63 = vadd.f32 5210869.0, %v173_v42  ;;  %v207_v0 = vmul.f32 %v205_v52, %v707_v15  ;;  %v237_v1 = vmul.f32 %v235_v53, %v710_v16 }
  0x83   :  { %v208_v2 = vadd.f32 109584.0, %v206_v59  ;;  %v238_v3 = vadd.f32 11246929.0, %v236_v60  ;;  %v264_v6 = vadd.f32 118124.0, %v262_v49  ;;  %400 = vpow2.f32 %v138_v46 }
  0x84   :  { %v209_v8 = vadd.f32 109584.0, %v207_v0  ;;  %v239_v9 = vadd.f32 11246929.0, %v237_v1  ;;  %v265_v11 = vadd.f32 118124.0, %v263_v54  ;;  %402 = vpow2.f32 %v142_v57 }
  0x85   :  { %v176_v18 = vmul.f32 %v174_v58, %v701_v12  ;;  %v210_v19 = vmul.f32 %v208_v2, %v701_v12  ;;  %v240_v20 = vmul.f32 %v238_v3, %v704_v13  ;;  %404 = vpow2.f32 %v144_v62  ;;  %v124_v59 = vld [vmem:[#allocation2] sm:$0xff]  ;;  %v125_v62 = vld [vmem:[#allocation2 + $0x8] sm:$0xff] }
  0x86   :  { %v177_v21 = vmul.f32 %v175_v63, %v707_v15  ;;  %v211_v22 = vmul.f32 %v209_v8, %v707_v15  ;;  %v241_v23 = vmul.f32 %v239_v9, %v710_v16  ;;  %v266_v27 = vmul.f32 %v264_v6, %v704_v13  ;;  %v132_v60 = vld [vmem:[#allocation10] sm:$0xff] }
  0x87   :  { %v212_v25 = vadd.f32 40320.0, %v210_v19  ;;  %v242_v26 = vadd.f32 10619610.0, %v240_v20  ;;  %v375_v14 = vadd.f32 -0.5, %v687_v4  ;;  %v267_v30 = vmul.f32 %v265_v11, %v710_v16 }
  0x88   :  { %v213_v28 = vadd.f32 40320.0, %v211_v22  ;;  %v243_v29 = vadd.f32 10619610.0, %v241_v23  ;;  %v376_v17 = vadd.f32 -0.5, %v689_v5  ;;  %v178_v31 = vadd.f32 11246929.0, %v176_v18 }
  0x89   :  { %406 = vrcp.f32 %v242_v26  ;;  %v289_v32 = vmul.f32 0.6931472, %v737_v50  ;;  %v291_v33 = vmul.f32 0.6931472, %v739_v55  ;;  %v179_v34 = vadd.f32 11246929.0, %v177_v21 }
  0x8a   :  { %408 = vrcp.f32 %v243_v29  ;;  %v299_v36 = vmul.f32 0.6931472, %v397_v56  ;;  %v301_v37 = vmul.f32 0.6931472, %v399_v61  ;;  %v268_v38 = vadd.f32 109584.0, %v266_v27 }
  0x8b   :  { %410 = vrcp.f32 %v212_v25  ;;  %v292_v39 = vmul.f32 %v693_v7, %v289_v32  ;;  %v293_v42 = vmul.f32 %v698_v10, %v291_v33  ;;  %v269_v43 = vadd.f32 109584.0, %v267_v30 }
  0x8c   :  { %412 = vrcp.f32 %v213_v28  ;;  %v302_v44 = vmul.f32 %v375_v14, %v299_v36  ;;  %v303_v45 = vmul.f32 %v376_v17, %v301_v37  ;;  %v328_v46 = vmul.f32 2.0, %v687_v4 }
  0x8d   :  { %414 = vpow2.f32 %v140_v51  ;;  %v401_v50 = vpop.eup %400  ;;  %v329_v48 = vmul.f32 2.0, %v689_v5  ;;  %v180_v52 = vmul.f32 %v178_v31, %v701_v12  ;;  %v270_v53 = vmul.f32 %v268_v38, %v704_v13 }
  0x8e   :  { %v304_v47 = vsub.f32 %v292_v39, %v302_v44  ;;  %v305_v55 = vsub.f32 %v293_v42, %v303_v45  ;;  %v403_v49 = vpop.eup %402  ;;  %v310_v7 = vmul.f32 0.5, %v752_v24  ;;  %v311_v10 = vmul.f32 0.5, %v759_v35  ;;  %v133_v24 = vld [vmem:[#allocation10 + $0x8] sm:$0xff] }
  0x8f   :  { %v405_v54 = vpop.eup %404  ;;  %v181_v56 = vmul.f32 %v179_v34, %v707_v15  ;;  %v271_v51 = vmul.f32 %v269_v43, %v710_v16  ;;  %v377_v58 = vadd.f32 -1.0, %v328_v46  ;;  %v378_v61 = vadd.f32 -1.0, %v329_v48 }
  0x90   :  { %v306_v4 = vadd.f32 0.5, %v304_v47  ;;  %v307_v57 = vadd.f32 0.5, %v305_v55  ;;  %v182_v63 = vadd.f32 10619610.0, %v180_v52  ;;  %v272_v35 = vadd.f32 40320.0, %v270_v53 }
  0x91   :  { %v183_v1 = vadd.f32 10619610.0, %v181_v56  ;;  %v273_v15 = vadd.f32 40320.0, %v271_v51  ;;  %v320_v6 = vsub.f32 %v124_v59, %v132_v60  ;;  %v332_v8 = vmul.f32 %v403_v49, %v377_v58 }
  0x92   :  { %v308_v5 = vsub.f32 %v306_v4, %v764_v40  ;;  %v309_v12 = vsub.f32 %v307_v57, %v766_v41  ;;  %v321_v40 = vsub.f32 %v125_v62, %v133_v24  ;;  %v333_v19 = vmul.f32 %v405_v54, %v378_v61 }
  0x93   :  { %v407_v13 = vpop.eup %406  ;;  %v322_v25 = vmul.f32 2.0, %v401_v50  ;;  %v324_v26 = vadd.f32 1.0, %v403_v49  ;;  %v334_v27 = vmul.f32 %v332_v8, %v320_v6  ;;  %v325_v28 = vadd.f32 1.0, %v405_v54 }
  0x94   :  { %v409_v0 = vpop.eup %408  ;;  %v312_v2 = vsub.f32 %v308_v5, %v310_v7  ;;  %v313_v16 = vsub.f32 %v309_v12, %v311_v10  ;;  %v276_v20 = vmul.f32 %v407_v13, %v182_v63  ;;  %v335_v29 = vmul.f32 %v333_v19, %v321_v40 }
  0x95   :  { %v411_v3 = vpop.eup %410  ;;  %v277_v22 = vmul.f32 %v409_v0, %v183_v1  ;;  %v326_v31 = vmul.f32 %v324_v26, %v322_v25  ;;  %v336_v32 = vmul.f32 %v334_v27, %v320_v6  ;;  %v342_v37 = vand.u32 2147483647, %v320_v6 }
  0x96   :  { %v413_v9 = vpop.eup %412  ;;  %v314_v11 = vmul.f32 1.442695, %v312_v2  ;;  %v316_v18 = vmul.f32 1.442695, %v313_v16  ;;  %v280_v21 = vmul.f32 %v411_v3, %v272_v35  ;;  %v337_v34 = vmul.f32 %v335_v29, %v321_v40 }
  0x97   :  { %v415_v41 = vpop.eup %414  ;;  %v281_v23 = vmul.f32 %v413_v9, %v273_v15  ;;  %v344_v38 = vadd.f32 %v403_v49, %v328_v46  ;;  %v343_v42 = vand.u32 2147483647, %v321_v40  ;;  %v345_v43 = vadd.f32 %v405_v54, %v329_v48 }
  0x98   :  { %416 = vpow2.f32 %v314_v11  ;;  %v323_v14 = vmul.f32 2.0, %v415_v41  ;;  %v282_v30 = vmul.f32 %v280_v21, %v276_v20  ;;  %v338_v44 = vadd.f32 %v336_v32, %v326_v31 }
  0x99   :  { %418 = vpow2.f32 %v316_v18  ;;  %v283_v17 = vmul.f32 %v281_v23, %v277_v22  ;;  %v346_v52 = vmul.f32 %v344_v38, %v342_v37  ;;  %v347_v7 = vmul.f32 %v345_v43, %v343_v42 }
  0x9a   :  { %v327_v33 = vmul.f32 %v325_v28, %v323_v14  ;;  %v284_v36 = vmul.f32 0.25, %v282_v30 }
  0x9b   :  { %v285_v39 = vmul.f32 0.25, %v283_v17 }
  0x9c   :  { %v339_v50 = vadd.f32 %v337_v34, %v327_v33 }
  0xa2   :  { %v417_v45 = vpop.eup %416 }
  0xa3   :  { %v419_v47 = vpop.eup %418  ;;  %v318_v55 = vmul.f32 %v417_v45, %v284_v36 }
  0xa4   :  { %v319_v53 = vmul.f32 %v419_v47, %v285_v39 }
  0xa5   :  { %v340_v10 = vmul.f32 %v338_v44, %v318_v55 }
  0xa6   :  { %v341_v56 = vmul.f32 %v339_v50, %v319_v53 }
  0xa7   :  { %v348_v51 = vadd.f32 %v346_v52, %v340_v10 }
  0xa8   :  { %v349_v4 = vadd.f32 %v347_v7, %v341_v56 }
  0xaa   :  { %v350_v57 = vadd.f32 %v349_v4, %v348_v51 }
  0xac   :  { %353 = vst [vmem:[#allocation11] sm:$0xff] %v350_v57 }
  0xad   :  { %541 = shalt.err (!%p538_p2)
}
  0xae   :  { %s542_s3 = scalar_lea.hbm %s822_s5, 128 }
  0xaf   :  { %p543_p3 = scmp.ne.s32.totalorder %s822_s5, %s542_s3  ;;  %p546_p4 = scmp.lt.u32.totalorder %s542_s3, %s822_s5 }
  0xb1   :  { %p548_p5 = pnand %p546_p4, %p543_p3 }
  0xb3   :  { %551 = shalt.err (!%p548_p5)
}
  0xb4   :  { %363 = dma.vmem_to_hbm [thread:$0]  %s361_s30, 128, %s822_s5, [#allocation4]  }
  0xb5   :  { %558 = dma.done.wait [#allocation4], 128  }
  0xb6   :  { %559 = vsyncadd [#allocation4], 4294967168 }
  0xb7   :  { %367 = vsyncpa [#allocation3], 1 }
  0xb8   :  { %368 = vsyncpa [#allocation6], 1 }
  0xb9   :  { %369 = vsyncpa [#allocation9], 1 }
  0xba   :  { %370 = vsyncpa [#allocation4], 1 }

</bundles_post_ra>
